<compile_context>
chip_gen: v7x
topology: tpu7x:2x2x1
jax: 0.10.0
libtpu: 0.0.40
codegen_flags: <defaults>
</compile_context>

<pallas_src>
import math

import jax
import jax.numpy as jnp
from jax.experimental import pallas as pl
from jax.experimental.pallas import tpu as pltpu


LANE = 128        # lane width: output features padded to a multiple of this
SUBLANE_F32 = 8   # f32 sublane tile: batch tile must be a multiple of this


# ---------------------------------------------------------------------------
# Pallas kernel: fused MLP (all Linear + ReLU layers in one VMEM-resident body)
# ---------------------------------------------------------------------------
def _mlp_kernel(*refs):
    # refs = (x_ref, w1_ref, b1_ref, w2_ref, b2_ref, ..., o_ref)
    # Weights arrive as bf16 [in, out]; biases as f32 [1, out]; x/out are f32.
    x_ref = refs[0]
    o_ref = refs[-1]
    params = refs[1:-1]
    n_layers = len(params) // 2

    h = x_ref[...]                                    # f32 activations
    for l in range(n_layers):
        w = params[2 * l][...]                        # bf16 [in, out]
        b = params[2 * l + 1][...]                    # f32  [1, out] -> broadcasts
        h = jnp.dot(h.astype(jnp.bfloat16), w,
                    preferred_element_type=jnp.float32) + b
        if l < n_layers - 1:                          # ReLU after all but the last
            h = jnp.maximum(h, 0.0)
    o_ref[...] = h.astype(o_ref.dtype)


def _choose_batch_tile(B):
    """Largest power-of-two tile <= 1024 dividing B, preferring >= 4 grid steps
    (pipelining + v7x 2-TC split), then >= 2; falls back to the full batch."""
    for min_steps in (4, 2):
        for t in (1024, 512, 256, 128, 64, 32, 16, 8):
            if t <= B and B % t == 0 and B // t >= min_steps:
                return t
    return B


def lift_dim_nonlinear_forward(x, params, *, batch_tile=None):
    """Run the LiftDimNonLinear MLP forward pass with a single fused Pallas call.

    x:      [batch, num_nodes] float32
    params: list of (W, b) with W: [in, out], b: [out]
    """
    B, d_in = x.shape
    d_out = params[-1][0].shape[1]

    if batch_tile is None:
        batch_tile = _choose_batch_tile(B)
    assert B % batch_tile == 0, "batch_tile must divide the batch size"
    assert batch_tile == B or batch_tile % SUBLANE_F32 == 0, (
        "batch_tile must be a multiple of 8 (f32 sublane tile) or the full batch")

    # Lane-dense output: pad final output features to a multiple of 128 so the
    # output stores are unmasked vst (not masked partial stores). Slice after.
    d_out_pad = max(LANE, ((d_out + LANE - 1) // LANE) * LANE)
    params = list(params)
    if d_out_pad != d_out:
        w_last, b_last = params[-1]
        w_last = jnp.pad(w_last, ((0, 0), (0, d_out_pad - d_out)))
        b_last = jnp.pad(b_last, ((0, d_out_pad - d_out),))
        params[-1] = (w_last, b_last)

    def build_and_call(single_buffer_weights):
        flat_inputs = [x]
        in_specs = [pl.BlockSpec((batch_tile, d_in), lambda i: (i, 0))]

        # Grid-invariant weights/biases (index_map is constant) never need
        # double buffering; single-buffering halves their VMEM footprint.
        w_kwargs = (dict(pipeline_mode=pl.Buffered(1))
                    if single_buffer_weights else {})

        flops = 0
        bytes_accessed = x.size * x.dtype.itemsize
        for (w, b) in params:
            w_bf16 = w.astype(jnp.bfloat16)        # half the weight DMA bytes
            b2d = b.reshape(1, -1).astype(jnp.float32)
            flat_inputs.append(w_bf16)
            in_specs.append(pl.BlockSpec(w.shape, lambda i: (0, 0), **w_kwargs))
            flat_inputs.append(b2d)
            in_specs.append(pl.BlockSpec(b2d.shape, lambda i: (0, 0), **w_kwargs))
            flops += 2 * B * w.shape[0] * w.shape[1]
            bytes_accessed += w_bf16.size * 2 + b2d.size * 4
        bytes_accessed += B * d_out_pad * 4

        # Rough VMEM estimate (double-buffered x/out tiles + resident weights
        # + f32 intermediate); raise the scoped limit only when actually
        # needed, capped well under the v7x 64 MiB physical ceiling.
        tile_bytes = 2 * batch_tile * (d_in + d_out_pad) * 4
        w_bytes = sum(w.size * 2 + b.size * 4 for w, b in params)
        w_bytes *= 1 if single_buffer_weights else 2
        est = tile_bytes + w_bytes + batch_tile * d_out_pad * 4
        cp_kwargs = {}
        if est > 12 * 1024 * 1024:
            cp_kwargs["vmem_limit_bytes"] = min(2 * est, 32 * 1024 * 1024)

        return pl.pallas_call(
            _mlp_kernel,
            out_shape=jax.ShapeDtypeStruct((B, d_out_pad), jnp.float32),
            grid=(B // batch_tile,),
            in_specs=in_specs,
            out_specs=pl.BlockSpec((batch_tile, d_out_pad), lambda i: (i, 0)),
            compiler_params=pltpu.CompilerParams(
                dimension_semantics=("parallel",), **cp_kwargs),
            cost_estimate=pl.CostEstimate(
                flops=flops, transcendentals=0, bytes_accessed=bytes_accessed),
        )(*flat_inputs)

    try:
        out = build_and_call(single_buffer_weights=True)
    except Exception:
        # Fallback if this Pallas version rejects pipeline_mode=pl.Buffered(1).
        out = build_and_call(single_buffer_weights=False)

    return out[:, :d_out]


# ---------------------------------------------------------------------------
# Deterministic parameter construction (mimics nn.Linear default init shapes)
# ---------------------------------------------------------------------------
def make_params(key, num_nodes, hidden_size, out_scale):
    dims = [num_nodes] + list(hidden_size) + [num_nodes * out_scale]
    params = []
    for i in range(len(dims) - 1):
        fan_in, fan_out = dims[i], dims[i + 1]
        k = 1.0 / math.sqrt(fan_in)
        key, kw, kb = jax.random.split(key, 3)
        w = jax.random.uniform(kw, (fan_in, fan_out), jnp.float32, -k, k)
        b = jax.random.uniform(kb, (fan_out,), jnp.float32, -k, k)
        params.append((w, b))
    return params


def reference_forward_f32(x, params):
    h = x
    for l, (w, b) in enumerate(params):
        h = h @ w + b
        if l < len(params) - 1:
            h = jnp.maximum(h, 0.0)
    return h


def reference_forward_bf16(x, params):
    # Mirrors the kernel's numerics: bf16 matmul inputs, f32 accumulation.
    h = x
    for l, (w, b) in enumerate(params):
        h = jnp.dot(h.astype(jnp.bfloat16), w.astype(jnp.bfloat16),
                    preferred_element_type=jnp.float32) + b
        if l < len(params) - 1:
            h = jnp.maximum(h, 0.0)
    return h


if __name__ == "__main__":
    key = jax.random.PRNGKey(0)

    # Small shapes consistent with the module:
    #   samples: [N, num_nodes] -> num_nodes = 4
    #   hidden_size = [32], out_scale = 8 -> out_shape = 32 (padded to 128 lanes)
    num_nodes = 4
    hidden_size = [32]
    out_scale = 8
    batch = 256            # >= 2 batch tiles so the pipeline / 2nd TC engage

    key, k_samples = jax.random.split(key)
    x = jax.random.normal(k_samples, (batch, num_nodes), jnp.float32)

    params = make_params(jax.random.PRNGKey(1), num_nodes, hidden_size, out_scale)

    # TODO(synk): loss/train/collect_samples (MSE vs. mu_prior, Adam loop,
    # DataLoader) are training-time utilities, not part of forward(); omitted.

    out = lift_dim_nonlinear_forward(x, params)
    jax.block_until_ready(out)

    assert out.shape == (batch, num_nodes * out_scale)

    # Tight check against a reference with matching (bf16-in / f32-acc) numerics.
    ref_bf16 = reference_forward_bf16(x, params)
    assert jnp.allclose(out, ref_bf16, atol=1e-3, rtol=1e-3), (
        float(jnp.max(jnp.abs(out - ref_bf16))))

    # Looser check against the exact f32 module semantics.
    ref_f32 = reference_forward_f32(x, params)
    assert jnp.allclose(out, ref_f32, atol=5e-2, rtol=5e-2), (
        float(jnp.max(jnp.abs(out - ref_f32))))

    print("KERNEL_OK")
</pallas_src>

<mosaic_0001>
module attributes {stable_mosaic.version = 11 : i64} {
  func.func @_mlp_kernel(%arg0: i32, %arg1: memref<64x4xf32, #tpu.memory_space<vmem>>, %arg2: memref<4x32xbf16, #tpu.memory_space<vmem>>, %arg3: memref<1x32xf32, #tpu.memory_space<vmem>>, %arg4: memref<32x128xbf16, #tpu.memory_space<vmem>>, %arg5: memref<1x128xf32, #tpu.memory_space<vmem>>, %arg6: memref<64x128xf32, #tpu.memory_space<vmem>>) attributes {dimension_semantics = [#tpu.dimension_semantics<parallel>], iteration_bounds = array<i64: 4>, scalar_prefetch = 0 : i64, scratch_operands = 0 : i64, tpu.core_type = #tpu.core_type<tc>, window_params = [{transform_indices = @transform_0, window_bounds = array<i64: 64, 4>}, {pipeline_mode = #tpu.pipeline_mode<synchronous>, transform_indices = @transform_1, window_bounds = array<i64: 4, 32>}, {pipeline_mode = #tpu.pipeline_mode<synchronous>, transform_indices = @transform_2, window_bounds = array<i64: 1, 32>}, {pipeline_mode = #tpu.pipeline_mode<synchronous>, transform_indices = @transform_3, window_bounds = array<i64: 32, 128>}, {pipeline_mode = #tpu.pipeline_mode<synchronous>, transform_indices = @transform_4, window_bounds = array<i64: 1, 128>}, {transform_indices = @transform_5, window_bounds = array<i64: 64, 128>}]} {
    %c0 = arith.constant 0 : index
    %c0_0 = arith.constant 0 : index
    %0 = vector.load %arg1[%c0, %c0_0] : memref<64x4xf32, #tpu.memory_space<vmem>>, vector<64x4xf32>
    %c0_1 = arith.constant 0 : index
    %c0_2 = arith.constant 0 : index
    %1 = vector.load %arg2[%c0_1, %c0_2] : memref<4x32xbf16, #tpu.memory_space<vmem>>, vector<4x32xbf16>
    %c0_3 = arith.constant 0 : index
    %c0_4 = arith.constant 0 : index
    %2 = vector.load %arg3[%c0_3, %c0_4] : memref<1x32xf32, #tpu.memory_space<vmem>>, vector<1x32xf32>
    %3 = arith.truncf %0 : vector<64x4xf32> to vector<64x4xbf16>
    %cst = arith.constant dense<0.000000e+00> : vector<64x32xf32>
    %4 = tpu.matmul %3, %1, %cst {dimension_numbers = #tpu.dot_dimension_numbers<[1], [0], [0], [1], [0, 0, 1, 1], [], []>} : vector<64x4xbf16>, vector<4x32xbf16>, vector<64x32xf32> -> vector<64x32xf32>
    %5 = vector.broadcast %2 : vector<1x32xf32> to vector<64x32xf32>
    %6 = arith.addf %4, %5 : vector<64x32xf32>
    %cst_5 = arith.constant 0.000000e+00 : f32
    %7 = vector.broadcast %cst_5 : f32 to vector<64x32xf32>
    %8 = arith.maximumf %6, %7 : vector<64x32xf32>
    %c0_6 = arith.constant 0 : index
    %c0_7 = arith.constant 0 : index
    %9 = vector.load %arg4[%c0_6, %c0_7] : memref<32x128xbf16, #tpu.memory_space<vmem>>, vector<32x128xbf16>
    %c0_8 = arith.constant 0 : index
    %c0_9 = arith.constant 0 : index
    %10 = vector.load %arg5[%c0_8, %c0_9] : memref<1x128xf32, #tpu.memory_space<vmem>>, vector<1x128xf32>
    %11 = arith.truncf %8 : vector<64x32xf32> to vector<64x32xbf16>
    %cst_10 = arith.constant dense<0.000000e+00> : vector<64x128xf32>
    %12 = tpu.matmul %11, %9, %cst_10 {dimension_numbers = #tpu.dot_dimension_numbers<[1], [0], [0], [1], [0, 0, 1, 1], [], []>} : vector<64x32xbf16>, vector<32x128xbf16>, vector<64x128xf32> -> vector<64x128xf32>
    %13 = vector.broadcast %10 : vector<1x128xf32> to vector<64x128xf32>
    %14 = arith.addf %12, %13 : vector<64x128xf32>
    %c0_11 = arith.constant 0 : index
    %c0_12 = arith.constant 0 : index
    %15 = vector.load %arg6[%c0_11, %c0_12] : memref<64x128xf32, #tpu.memory_space<vmem>>, vector<64x128xf32>
    tpu.vector_store %arg6[%c0_11, %c0_12], %14 {strides = array<i32>} : memref<64x128xf32, #tpu.memory_space<vmem>>, vector<64x128xf32>,
    return
  }
  func.func @transform_0(%arg0: i32) -> (i32, i32) {
    %c0_i32 = arith.constant 0 : i32
    %c0_i32_0 = arith.constant 0 : i32
    return %arg0, %c0_i32 : i32, i32
  }
  func.func @transform_1(%arg0: i32) -> (i32, i32) {
    %c0_i32 = arith.constant 0 : i32
    %c0_i32_0 = arith.constant 0 : i32
    %c0_i32_1 = arith.constant 0 : i32
    return %c0_i32, %c0_i32_0 : i32, i32
  }
  func.func @transform_2(%arg0: i32) -> (i32, i32) {
    %c0_i32 = arith.constant 0 : i32
    %c0_i32_0 = arith.constant 0 : i32
    %c0_i32_1 = arith.constant 0 : i32
    return %c0_i32, %c0_i32_0 : i32, i32
  }
  func.func @transform_3(%arg0: i32) -> (i32, i32) {
    %c0_i32 = arith.constant 0 : i32
    %c0_i32_0 = arith.constant 0 : i32
    %c0_i32_1 = arith.constant 0 : i32
    return %c0_i32, %c0_i32_0 : i32, i32
  }
  func.func @transform_4(%arg0: i32) -> (i32, i32) {
    %c0_i32 = arith.constant 0 : i32
    %c0_i32_0 = arith.constant 0 : i32
    %c0_i32_1 = arith.constant 0 : i32
    return %c0_i32, %c0_i32_0 : i32, i32
  }
  func.func @transform_5(%arg0: i32) -> (i32, i32) {
    %c0_i32 = arith.constant 0 : i32
    %c0_i32_0 = arith.constant 0 : i32
    return %arg0, %c0_i32 : i32, i32
  }
}

module attributes {stable_mosaic.version = 11 : i64} {
  func.func @_mlp_kernel(%arg0: i32, %arg1: memref<64x4xf32, #tpu.memory_space<vmem>>, %arg2: memref<4x32xbf16, #tpu.memory_space<vmem>>, %arg3: memref<1x32xf32, #tpu.memory_space<vmem>>, %arg4: memref<32x128xbf16, #tpu.memory_space<vmem>>, %arg5: memref<1x128xf32, #tpu.memory_space<vmem>>, %arg6: memref<64x128xf32, #tpu.memory_space<vmem>>) attributes {dimension_semantics = [#tpu.dimension_semantics<parallel>], iteration_bounds = array<i64: 4>, scalar_prefetch = 0 : i64, scratch_operands = 0 : i64, tpu.core_type = #tpu.core_type<tc>, window_params = [{transform_indices = @transform_0, window_bounds = array<i64: 64, 4>}, {pipeline_mode = #tpu.pipeline_mode<synchronous>, transform_indices = @transform_1, window_bounds = array<i64: 4, 32>}, {pipeline_mode = #tpu.pipeline_mode<synchronous>, transform_indices = @transform_2, window_bounds = array<i64: 1, 32>}, {pipeline_mode = #tpu.pipeline_mode<synchronous>, transform_indices = @transform_3, window_bounds = array<i64: 32, 128>}, {pipeline_mode = #tpu.pipeline_mode<synchronous>, transform_indices = @transform_4, window_bounds = array<i64: 1, 128>}, {transform_indices = @transform_5, window_bounds = array<i64: 64, 128>}]} {
    %c0 = arith.constant 0 : index
    %c0_0 = arith.constant 0 : index
    %0 = vector.load %arg1[%c0, %c0_0] : memref<64x4xf32, #tpu.memory_space<vmem>>, vector<64x4xf32>
    %c0_1 = arith.constant 0 : index
    %c0_2 = arith.constant 0 : index
    %1 = vector.load %arg2[%c0_1, %c0_2] : memref<4x32xbf16, #tpu.memory_space<vmem>>, vector<4x32xbf16>
    %c0_3 = arith.constant 0 : index
    %c0_4 = arith.constant 0 : index
    %2 = vector.load %arg3[%c0_3, %c0_4] : memref<1x32xf32, #tpu.memory_space<vmem>>, vector<1x32xf32>
    %3 = arith.truncf %0 : vector<64x4xf32> to vector<64x4xbf16>
    %cst = arith.constant dense<0.000000e+00> : vector<64x32xf32>
    %4 = tpu.matmul %3, %1, %cst {dimension_numbers = #tpu.dot_dimension_numbers<[1], [0], [0], [1], [0, 0, 1, 1], [], []>} : vector<64x4xbf16>, vector<4x32xbf16>, vector<64x32xf32> -> vector<64x32xf32>
    %5 = vector.broadcast %2 : vector<1x32xf32> to vector<64x32xf32>
    %6 = arith.addf %4, %5 : vector<64x32xf32>
    %cst_5 = arith.constant 0.000000e+00 : f32
    %7 = vector.broadcast %cst_5 : f32 to vector<64x32xf32>
    %8 = arith.maximumf %6, %7 : vector<64x32xf32>
    %c0_6 = arith.constant 0 : index
    %c0_7 = arith.constant 0 : index
    %9 = vector.load %arg4[%c0_6, %c0_7] : memref<32x128xbf16, #tpu.memory_space<vmem>>, vector<32x128xbf16>
    %c0_8 = arith.constant 0 : index
    %c0_9 = arith.constant 0 : index
    %10 = vector.load %arg5[%c0_8, %c0_9] : memref<1x128xf32, #tpu.memory_space<vmem>>, vector<1x128xf32>
    %11 = arith.truncf %8 : vector<64x32xf32> to vector<64x32xbf16>
    %cst_10 = arith.constant dense<0.000000e+00> : vector<64x128xf32>
    %12 = tpu.matmul %11, %9, %cst_10 {dimension_numbers = #tpu.dot_dimension_numbers<[1], [0], [0], [1], [0, 0, 1, 1], [], []>} : vector<64x32xbf16>, vector<32x128xbf16>, vector<64x128xf32> -> vector<64x128xf32>
    %13 = vector.broadcast %10 : vector<1x128xf32> to vector<64x128xf32>
    %14 = arith.addf %12, %13 : vector<64x128xf32>
    %c0_11 = arith.constant 0 : index
    %c0_12 = arith.constant 0 : index
    %15 = vector.load %arg6[%c0_11, %c0_12] : memref<64x128xf32, #tpu.memory_space<vmem>>, vector<64x128xf32>
    tpu.vector_store %arg6[%c0_11, %c0_12], %14 {strides = array<i32>} : memref<64x128xf32, #tpu.memory_space<vmem>>, vector<64x128xf32>,
    return
  }
  func.func @transform_0(%arg0: i32) -> (i32, i32) {
    %c0_i32 = arith.constant 0 : i32
    %c0_i32_0 = arith.constant 0 : i32
    return %arg0, %c0_i32 : i32, i32
  }
  func.func @transform_1(%arg0: i32) -> (i32, i32) {
    %c0_i32 = arith.constant 0 : i32
    %c0_i32_0 = arith.constant 0 : i32
    %c0_i32_1 = arith.constant 0 : i32
    return %c0_i32, %c0_i32_0 : i32, i32
  }
  func.func @transform_2(%arg0: i32) -> (i32, i32) {
    %c0_i32 = arith.constant 0 : i32
    %c0_i32_0 = arith.constant 0 : i32
    %c0_i32_1 = arith.constant 0 : i32
    return %c0_i32, %c0_i32_0 : i32, i32
  }
  func.func @transform_3(%arg0: i32) -> (i32, i32) {
    %c0_i32 = arith.constant 0 : i32
    %c0_i32_0 = arith.constant 0 : i32
    %c0_i32_1 = arith.constant 0 : i32
    return %c0_i32, %c0_i32_0 : i32, i32
  }
  func.func @transform_4(%arg0: i32) -> (i32, i32) {
    %c0_i32 = arith.constant 0 : i32
    %c0_i32_0 = arith.constant 0 : i32
    %c0_i32_1 = arith.constant 0 : i32
    return %c0_i32, %c0_i32_0 : i32, i32
  }
  func.func @transform_5(%arg0: i32) -> (i32, i32) {
    %c0_i32 = arith.constant 0 : i32
    %c0_i32_0 = arith.constant 0 : i32
    return %arg0, %c0_i32 : i32, i32
  }
}

</mosaic_0001>

<bundles_post_ra>
// kernel: tpu_custom_call.1
= control target key start
LH: loop header
LB: loop body
LE: loop exit
PB: predicated region body
PF: predicated region fallthrough
CT: control target
= control target key end

     0   :  { %10 = vsyncpa [#allocation3], 0  ;;  %s850_s0 = inlined_call_operand.vmem [shape: f32[256,4], index: 0, kind: input, shape index: {}]   ;;  %s851_s1 = inlined_call_operand.vmem [shape: bf16[4,32], index: 1, kind: input, shape index: {}]   ;;  %s852_s2 = inlined_call_operand.vmem [shape: f32[1,32], index: 2, kind: input, shape index: {}]   ;;  %s853_s3 = inlined_call_operand.vmem [shape: bf16[32,128], index: 3, kind: input, shape index: {}]   ;;  %s854_s4 = inlined_call_operand.vmem [shape: f32[1,128], index: 4, kind: input, shape index: {}]   ;;  %s855_s5 = inlined_call_operand.hbm [shape: f32[256,128], index: 5, kind: output, shape index: {}]  }
   0x1   :  { %12 = vsyncpa [#allocation3 + $0x1], 0  ;;  %s725_s18 = smov 0   ;;  %s727_s19 = smov 0  }
   0x2   :  { %s729_s20 = smov 0   ;;  %s731_s21 = smov 0  }
   0x3 LB: > { %s746_s22 = sadd.s32 4294967295, %s690_s21   ;;  %s526_s23 = sadd.s32 4294967294, %s690_s21   ;;  %s690_s21 = sphi %s731_s21, %s861_s21   ;;  %s686_s20 = sphi %s729_s20, %s860_s20   ;;  %s682_s19 = sphi %s727_s19, %s859_s19   ;;  %s678_s18 = sphi %s725_s18, %s858_s18  }
   0x4   : > { %s750_s24 = sadd.s32 1, %s690_s21   ;;  %s135_s25 = sadd.s32 1, %s686_s20 }
   0x5   : > { %s132_s26 = ssub.s32 %s690_s21, %s750_s24  ;;  %p145_p0 = scmp.ne.s32.totalorder %s686_s20, %s682_s19 }
   0x6   : > { %p133_p1 = scmp.eq.s32.totalorder %s132_s26, 0  ;;  %p146_p2 = scmp.eq.s32.totalorder %s746_s22, 3 }
   0x7   : > { %p151_p3 = scmp.ne.s32.totalorder %s682_s19, %s678_s18  ;;  %p152_p4 = scmp.eq.s32.totalorder %s526_s23, 3 }
   0x8   : > { %s761_s27 = scalar_select %p133_p1, %s686_s20, %s135_s25  }
   0x9   : > { %p763_p5 = por %p146_p2, %p145_p0  ;;  %p767_p6 = por %p152_p4, %p151_p3 }
   0xa   : > { %p529_p7 = scmp.ge.s32.totalorder %s690_s21, 1  ;;  %p191_p8 = scmp.lt.s32.totalorder %s690_s21, 5 }
   0xc   : > { %p192_p9 = pnand %p529_p7, %p191_p8 }
   0xd   : > { %v235_v0 = vld [vmem:[%s851_s1] sm:$0x3] (!%p192_p9)  ;;  %vm260_vm0 = vcmask (!%p192_p9), 1041408   ;;  %s531_s7 = sshll.u32 (!%p192_p9), %s746_s22, 3  ;;  %vm247_vm1 = vcmask (!%p192_p9), 31744   ;;  %v627_v15 = vld [vmem:[%s853_s3 + $0x8] sm:$0xff] (!%p192_p9)  }
   0xe   : > { %195 = sbr.rel (%p192_p9) target bundleno = 490 (0x1ea), region = 40  ;;  %584 = vmatprep.subr.msk.bf16.mxu0 (!%p192_p9), %vm260_vm0, %v235_v0  ;;  %v262_v1 = vsel (!%p192_p9), %vm260_vm0, %v235_v0, 0  ;;  %p220_p10 = scmp.lt.s32.totalorder (!%p192_p9), %s531_s7, 31  ;;  %v626_v14 = vld [vmem:[%s853_s3] sm:$0xff] (!%p192_p9)   ;;  %vm364_vm2 = vcmask (!%p192_p9), 261120  }
   0xf   : > { %563 = vmatpush3.bf16.msra.mxu0 (!%p192_p9), %v262_v1  ;;  %572 = vmatprep.subr.bf16.mxu1 (!%p192_p9), %v626_v14  ;;  %v533_v16 = vld [vmem:[%s852_s2] ss:$0 sm:$0xff] (!%p192_p9)  ;;  %s216_s23 = sand.u32 (!%p192_p9), 1, %s682_s19   ;;  %s692_s13 = smov (!%p192_p9), [#allocation2]  }
  0x10   : > { %573 = vmatpush3.bf16.msra.mxu1 (!%p192_p9), %v626_v14  ;;  %s530_s25 = sshll.u32 (!%p192_p9), %s216_s23, 6  ;;  %v538_v45 = vld [vmem:[%s854_s4] ss:$0 sm:$0xff] (!%p192_p9)  ;;  %s632_s14 = sshll.u32 (!%p192_p9), %s692_s13, 4  ;;  %s633_s14 = int_to_ptr.vmem [resolvable:$false] %s632_s14 }
  0x11   : > { %574 = vmatprep.subr.bf16.mxu1 (!%p192_p9), %v627_v15  ;;  %s218_s6 = scalar_lea.vmem (!%p192_p9), [#allocation2], %s530_s25  ;;  %s634_s15 = scalar_lea.vmem (!%p192_p9), %s633_s14, 2048 }
  0x14   : > { %575 = vmatpush3.bf16.msra.mxu1 (!%p192_p9), %v627_v15 }
  0x15   : > { %s863_s7 = smov (!%p220_p10, %s531_s7), 31 }
  0x16   : > { %s532_s8 = sshll.u32 %s863_s7, 3  ;;  %s550_s7 = sshll.u32 %s746_s22, 10 }
  0x17   : > { %s223_s11 = scalar_lea.vmem %s850_s0, %s532_s8  ;;  %s464_s8 = sshll.u32 %s218_s6, 4  ;;  %s805_s8 = int_to_ptr.vmem [resolvable:$true] %s464_s8 }
  0x18   : > { %v227_v2 = vld [vmem:[%s223_s11] sm:$0xff]  ;;  %v228_v3 = vld [vmem:[%s223_s11 + $0x8] sm:$0xff]  ;;  %v229_v4 = vld [vmem:[%s223_s11 + $0x10] sm:$0xff]  ;;  %s809_s22 = scalar_lea.sflag [#allocation3], %s216_s23  ;;  %s628_s12 = scalar_lea.vmem %s805_s8, 1024 }
  0x19   : > { %v237_v5 = vpack.c.bf16 %v228_v3, %v227_v2  ;;  %v230_v6 = vld [vmem:[%s223_s11 + $0x18] sm:$0xff]  ;;  %v231_v7 = vld [vmem:[%s223_s11 + $0x20] sm:$0xff]  ;;  %v232_v8 = vld [vmem:[%s223_s11 + $0x28] sm:$0xff]  ;;  %p629_p11 = scmp.ne.s32.totalorder %s805_s8, %s628_s12  ;;  %p635_p0 = scmp.lt.s32.totalorder %s805_s8, %s633_s14 }
  0x1a   : > { %v238_v9 = vpack.c.bf16 %v230_v6, %v229_v4  ;;  %v239_v10 = vpack.c.bf16 %v232_v8, %v231_v7  ;;  %v233_v11 = vld [vmem:[%s223_s11 + $0x30] sm:$0xff]  ;;  %v234_v12 = vld [vmem:[%s223_s11 + $0x38] sm:$0xff]  ;;  %s803_s11 = scalar_lea.hbm %s855_s5, %s550_s7  ;;  %p636_p1 = scmp.lt.s32.totalorder %s634_s15, %s628_s12 }
  0x1b   : > { %564 = vmatprep.mubr.msk.bf16.mxu0 %vm247_vm1, %v237_v5  ;;  %v240_v13 = vpack.c.bf16 %v234_v12, %v233_v11  ;;  %p630_p12 = pnand %p629_p11, %p763_p5 }
  0x1c   : > { %565 = vmatmul.mubr.msk.bf16.vlgmr.msra.gmra.mrb[0].mxu0 %vm247_vm1, %v238_v9  ;;  %p637_p2 = por %p636_p1, %p635_p0 }
  0x1d   : > { %568 = vmatprep.mubr.msk.bf16.mxu0 %vm247_vm1, %v239_v10  ;;  %p631_p13 = pneg %p630_p12 }
  0x1f   : > { %p638_p3 = pnand %p637_p2, %p631_p13 }
  0x24   : > { %569 = vmatmul.mubr.msk.bf16.gmra.mrb[4].mxu0 %vm247_vm1, %v240_v13 }
  0xef   : > { %v566_v17 = vpop.f32.mrb[0].mxu0 }
  0xf0   : > { %v307_v18 = vadd.f32 %v566_v17, %v533_v16  ;;  %v298_v19 = vpop.f32.mrb[1].mxu0 }
  0xf1   : > { %v299_v20 = vadd.f32 %v533_v16, %v298_v19  ;;  %v567_v21 = vpop.f32.mrb[2].mxu0 }
  0xf2   : > { %v310_v22 = vadd.f32 %v567_v21, %v533_v16  ;;  %v301_v23 = vpop.f32.mrb[3].mxu0  ;;  %v331_v25 = vmax.f32 %v307_v18, 0.0 }
  0xf3   : > { %v302_v24 = vadd.f32 %v533_v16, %v301_v23  ;;  %v329_v27 = vmax.f32 %v299_v20, 0.0 }
  0xf4   : > { %v332_v26 = vmax.f32 %v310_v22, 0.0 }
  0xf5   : > { %v330_v28 = vmax.f32 %v302_v24, 0.0 }
  0xf6   : > { %v343_v29 = vpack.c.bf16 %v332_v26, %v331_v25 }
  0xf7   : > { %v570_v30 = vpop.f32.mrb[4].mxu0  ;;  %v342_v31 = vpack.c.bf16 %v330_v28, %v329_v27 }
  0xf8   : > { %v323_v32 = vadd.f32 %v570_v30, %v533_v16  ;;  %v314_v33 = vpop.f32.mrb[5].mxu0 }
  0xf9   : > { %v315_v34 = vadd.f32 %v533_v16, %v314_v33  ;;  %v571_v35 = vpop.f32.mrb[6].mxu0  ;;  %576 = vmatprep.mubr.msk.bf16.mxu1 %vm364_vm2, %v342_v31 }
  0xfa   : > { %v326_v36 = vadd.f32 %v571_v35, %v533_v16  ;;  %v317_v37 = vpop.f32.mrb[7].mxu0  ;;  %577 = vmatmul.mubr.msk.bf16.vlgmr.msra.gmra.mrb[0].mxu1 %vm364_vm2, %v343_v29  ;;  %v335_v39 = vmax.f32 %v323_v32, 0.0 }
  0xfb   : > { %v318_v38 = vadd.f32 %v533_v16, %v317_v37  ;;  %v333_v41 = vmax.f32 %v315_v34, 0.0 }
  0xfc   : > { %v336_v40 = vmax.f32 %v326_v36, 0.0 }
  0xfd   : > { %v334_v42 = vmax.f32 %v318_v38, 0.0 }
  0xfe   : > { %v345_v43 = vpack.c.bf16 %v336_v40, %v335_v39 }
  0xff   : > { %v344_v44 = vpack.c.bf16 %v334_v42, %v333_v41 }
 0x101   : > { %580 = vmatprep.mubr.msk.bf16.mxu1 %vm364_vm2, %v344_v44 }
 0x102   : > { %581 = vmatmul.mubr.msk.bf16.gmra.mrb[4].mxu1 %vm364_vm2, %v345_v43 }
 0x1cd   : > { %v578_v46 = vpop.f32.mrb[0].mxu1 }
 0x1ce   : > { %v420_v47 = vadd.f32 %v578_v46, %v538_v45  ;;  %v411_v48 = vpop.f32.mrb[1].mxu1 }
 0x1cf   : > { %v412_v49 = vadd.f32 %v538_v45, %v411_v48  ;;  %v579_v50 = vpop.f32.mrb[2].mxu1 }
 0x1d0   : > { %444 = vst [vmem:[%s218_s6 + $0x10] sm:$0xff] %v420_v47  ;;  %v423_v51 = vadd.f32 %v579_v50, %v538_v45  ;;  %v414_v52 = vpop.f32.mrb[3].mxu1 }
 0x1d1   : > { %442 = vst [vmem:[%s218_s6] sm:$0xff] %v412_v49  ;;  %v415_v53 = vadd.f32 %v538_v45, %v414_v52 }
 0x1d2   : > { %445 = vst [vmem:[%s218_s6 + $0x18] sm:$0xff] %v423_v51 }
 0x1d3   : > { %443 = vst [vmem:[%s218_s6 + $0x8] sm:$0xff] %v415_v53 }
 0x1d5   : > { %v582_v54 = vpop.f32.mrb[4].mxu1 }
 0x1d6   : > { %v436_v55 = vadd.f32 %v582_v54, %v538_v45  ;;  %v427_v56 = vpop.f32.mrb[5].mxu1 }
 0x1d7   : > { %v428_v57 = vadd.f32 %v538_v45, %v427_v56  ;;  %v583_v58 = vpop.f32.mrb[6].mxu1 }
 0x1d8   : > { %448 = vst [vmem:[%s218_s6 + $0x30] sm:$0xff] %v436_v55  ;;  %v439_v59 = vadd.f32 %v583_v58, %v538_v45  ;;  %v430_v60 = vpop.f32.mrb[7].mxu1 }
 0x1d9   : > { %446 = vst [vmem:[%s218_s6 + $0x20] sm:$0xff] %v428_v57  ;;  %v431_v61 = vadd.f32 %v538_v45, %v430_v60 }
 0x1da   : > { %449 = vst [vmem:[%s218_s6 + $0x38] sm:$0xff] %v439_v59 }
 0x1db   : > { %447 = vst [vmem:[%s218_s6 + $0x28] sm:$0xff] %v431_v61 }
 0x1dc   : > { %641 = shalt.err (!%p638_p3)
}
 0x1dd   : > { %s642_s16 = scalar_lea.hbm %s803_s11, 1024  ;;  %s646_s25 = scalar_lea.hbm %s855_s5, 4096 }
 0x1de   : > { %p643_p4 = scmp.ne.s32.totalorder %s803_s11, %s642_s16  ;;  %p647_p9 = scmp.lt.u32.totalorder %s803_s11, %s855_s5 }
 0x1df   : > { %p648_p10 = scmp.lt.u32.totalorder %s646_s25, %s642_s16  ;;  %p650_p12 = scmp.lt.u32.totalorder %s642_s16, %s803_s11 }
 0x1e0   : > { %p644_p7 = pnand %p643_p4, %p763_p5 }
 0x1e1   : > { %p649_p11 = por %p648_p10, %p647_p9 }
 0x1e2   : > { %p645_p8 = pneg %p644_p7 }
 0x1e3   : > { %p651_p13 = por %p650_p12, %p649_p11 }
 0x1e5   : > { %p652_p0 = pnand %p651_p13, %p645_p8 }
 0x1e7   : > { %655 = shalt.err (!%p652_p0)
}
 0x1e8   : > { %s693_s6 = smov 128   ;;  %s694_s7 = smov 8  }
 0x1e9   : > { %585 = dma.vmem_to_hbm [thread:$0]  (%p763_p5), %s805_s8, 1024, %s803_s11, %s809_s22, %s693_s6, %s693_s6, %s694_s7  }
 0x1ea PF: > { %p591_p1 = scmp.ge.s32.totalorder %s690_s21, 2  ;;  %s479_s9 = sand.u32 1, %s678_s18  }
 0x1eb   : > { %s480_s10 = scalar_lea.sflag [#allocation3], %s479_s9 }
 0x1ec   : > { %p588_p2 = pnand %p591_p1, %p767_p6 }
 0x1ee   : > { %673 = dma.done.wait (!%p588_p2), %s480_s10, 1024  }
 0x1ef   : > { %675 = vsyncadd (!%p588_p2), %s480_s10, 4294966272  ;;  %p15_p3 = scmp.ge.s32.totalorder %s750_s24, 6   ;;  %s858_s18 = smov %s682_s19 }
 0x1f0   : > { %s859_s19 = smov %s686_s20  ;;  %s860_s20 = smov %s761_s27 }
 0x1f1   : > { %s861_s21 = smov %s750_s24  ;;  %17 = sbr.rel (!%p15_p3) target bundleno = 3 (0x3), region = 75 }
 0x1f8   :  { %485 = vsyncpa [#allocation3], 1 }
 0x1f9   :  { %487 = vsyncpa [#allocation3 + $0x1], 1 }

// kernel: tpu_custom_call.1
= control target key start
LH: loop header
LB: loop body
LE: loop exit
PB: predicated region body
PF: predicated region fallthrough
CT: control target
= control target key end

     0   :  { %10 = vsyncpa [#allocation3], 0  ;;  %s850_s0 = inlined_call_operand.vmem [shape: f32[256,4], index: 0, kind: input, shape index: {}]   ;;  %s851_s1 = inlined_call_operand.vmem [shape: bf16[4,32], index: 1, kind: input, shape index: {}]   ;;  %s852_s2 = inlined_call_operand.vmem [shape: f32[1,32], index: 2, kind: input, shape index: {}]   ;;  %s853_s3 = inlined_call_operand.vmem [shape: bf16[32,128], index: 3, kind: input, shape index: {}]   ;;  %s854_s4 = inlined_call_operand.vmem [shape: f32[1,128], index: 4, kind: input, shape index: {}]   ;;  %s855_s5 = inlined_call_operand.hbm [shape: f32[256,128], index: 5, kind: output, shape index: {}]  }
   0x1   :  { %12 = vsyncpa [#allocation3 + $0x1], 0  ;;  %s725_s18 = smov 0   ;;  %s727_s19 = smov 0  }
   0x2   :  { %s729_s20 = smov 0   ;;  %s731_s21 = smov 0  }
   0x3 LB: > { %s746_s22 = sadd.s32 4294967295, %s690_s21   ;;  %s526_s23 = sadd.s32 4294967294, %s690_s21   ;;  %s690_s21 = sphi %s731_s21, %s861_s21   ;;  %s686_s20 = sphi %s729_s20, %s860_s20   ;;  %s682_s19 = sphi %s727_s19, %s859_s19   ;;  %s678_s18 = sphi %s725_s18, %s858_s18  }
   0x4   : > { %s750_s24 = sadd.s32 1, %s690_s21   ;;  %s135_s25 = sadd.s32 1, %s686_s20 }
   0x5   : > { %s132_s26 = ssub.s32 %s690_s21, %s750_s24  ;;  %p145_p0 = scmp.ne.s32.totalorder %s686_s20, %s682_s19 }
   0x6   : > { %p133_p1 = scmp.eq.s32.totalorder %s132_s26, 0  ;;  %p146_p2 = scmp.eq.s32.totalorder %s746_s22, 3 }
   0x7   : > { %p151_p3 = scmp.ne.s32.totalorder %s682_s19, %s678_s18  ;;  %p152_p4 = scmp.eq.s32.totalorder %s526_s23, 3 }
   0x8   : > { %s761_s27 = scalar_select %p133_p1, %s686_s20, %s135_s25  }
   0x9   : > { %p763_p5 = por %p146_p2, %p145_p0  ;;  %p767_p6 = por %p152_p4, %p151_p3 }
   0xa   : > { %p529_p7 = scmp.ge.s32.totalorder %s690_s21, 1  ;;  %p191_p8 = scmp.lt.s32.totalorder %s690_s21, 5 }
   0xc   : > { %p192_p9 = pnand %p529_p7, %p191_p8 }
   0xd   : > { %v235_v0 = vld [vmem:[%s851_s1] sm:$0x3] (!%p192_p9)  ;;  %vm260_vm0 = vcmask (!%p192_p9), 1041408   ;;  %s531_s7 = sshll.u32 (!%p192_p9), %s746_s22, 3  ;;  %vm247_vm1 = vcmask (!%p192_p9), 31744   ;;  %v627_v15 = vld [vmem:[%s853_s3 + $0x8] sm:$0xff] (!%p192_p9)  }
   0xe   : > { %195 = sbr.rel (%p192_p9) target bundleno = 490 (0x1ea), region = 40  ;;  %584 = vmatprep.subr.msk.bf16.mxu0 (!%p192_p9), %vm260_vm0, %v235_v0  ;;  %v262_v1 = vsel (!%p192_p9), %vm260_vm0, %v235_v0, 0  ;;  %p220_p10 = scmp.lt.s32.totalorder (!%p192_p9), %s531_s7, 31  ;;  %v626_v14 = vld [vmem:[%s853_s3] sm:$0xff] (!%p192_p9)   ;;  %vm364_vm2 = vcmask (!%p192_p9), 261120  }
   0xf   : > { %563 = vmatpush3.bf16.msra.mxu0 (!%p192_p9), %v262_v1  ;;  %572 = vmatprep.subr.bf16.mxu1 (!%p192_p9), %v626_v14  ;;  %v533_v16 = vld [vmem:[%s852_s2] ss:$0 sm:$0xff] (!%p192_p9)  ;;  %s216_s23 = sand.u32 (!%p192_p9), 1, %s682_s19   ;;  %s692_s13 = smov (!%p192_p9), [#allocation2]  }
  0x10   : > { %573 = vmatpush3.bf16.msra.mxu1 (!%p192_p9), %v626_v14  ;;  %s530_s25 = sshll.u32 (!%p192_p9), %s216_s23, 6  ;;  %v538_v45 = vld [vmem:[%s854_s4] ss:$0 sm:$0xff] (!%p192_p9)  ;;  %s632_s14 = sshll.u32 (!%p192_p9), %s692_s13, 4  ;;  %s633_s14 = int_to_ptr.vmem [resolvable:$false] %s632_s14 }
  0x11   : > { %574 = vmatprep.subr.bf16.mxu1 (!%p192_p9), %v627_v15  ;;  %s218_s6 = scalar_lea.vmem (!%p192_p9), [#allocation2], %s530_s25  ;;  %s634_s15 = scalar_lea.vmem (!%p192_p9), %s633_s14, 2048 }
  0x14   : > { %575 = vmatpush3.bf16.msra.mxu1 (!%p192_p9), %v627_v15 }
  0x15   : > { %s863_s7 = smov (!%p220_p10, %s531_s7), 31 }
  0x16   : > { %s532_s8 = sshll.u32 %s863_s7, 3  ;;  %s550_s7 = sshll.u32 %s746_s22, 10 }
  0x17   : > { %s223_s11 = scalar_lea.vmem %s850_s0, %s532_s8  ;;  %s464_s8 = sshll.u32 %s218_s6, 4  ;;  %s805_s8 = int_to_ptr.vmem [resolvable:$true] %s464_s8 }
  0x18   : > { %v227_v2 = vld [vmem:[%s223_s11] sm:$0xff]  ;;  %v228_v3 = vld [vmem:[%s223_s11 + $0x8] sm:$0xff]  ;;  %v229_v4 = vld [vmem:[%s223_s11 + $0x10] sm:$0xff]  ;;  %s809_s22 = scalar_lea.sflag [#allocation3], %s216_s23  ;;  %s628_s12 = scalar_lea.vmem %s805_s8, 1024 }
  0x19   : > { %v237_v5 = vpack.c.bf16 %v228_v3, %v227_v2  ;;  %v230_v6 = vld [vmem:[%s223_s11 + $0x18] sm:$0xff]  ;;  %v231_v7 = vld [vmem:[%s223_s11 + $0x20] sm:$0xff]  ;;  %v232_v8 = vld [vmem:[%s223_s11 + $0x28] sm:$0xff]  ;;  %p629_p11 = scmp.ne.s32.totalorder %s805_s8, %s628_s12  ;;  %p635_p0 = scmp.lt.s32.totalorder %s805_s8, %s633_s14 }
  0x1a   : > { %v238_v9 = vpack.c.bf16 %v230_v6, %v229_v4  ;;  %v239_v10 = vpack.c.bf16 %v232_v8, %v231_v7  ;;  %v233_v11 = vld [vmem:[%s223_s11 + $0x30] sm:$0xff]  ;;  %v234_v12 = vld [vmem:[%s223_s11 + $0x38] sm:$0xff]  ;;  %s803_s11 = scalar_lea.hbm %s855_s5, %s550_s7  ;;  %p636_p1 = scmp.lt.s32.totalorder %s634_s15, %s628_s12 }
  0x1b   : > { %564 = vmatprep.mubr.msk.bf16.mxu0 %vm247_vm1, %v237_v5  ;;  %v240_v13 = vpack.c.bf16 %v234_v12, %v233_v11  ;;  %p630_p12 = pnand %p629_p11, %p763_p5 }
  0x1c   : > { %565 = vmatmul.mubr.msk.bf16.vlgmr.msra.gmra.mrb[0].mxu0 %vm247_vm1, %v238_v9  ;;  %p637_p2 = por %p636_p1, %p635_p0 }
  0x1d   : > { %568 = vmatprep.mubr.msk.bf16.mxu0 %vm247_vm1, %v239_v10  ;;  %p631_p13 = pneg %p630_p12 }
  0x1f   : > { %p638_p3 = pnand %p637_p2, %p631_p13 }
  0x24   : > { %569 = vmatmul.mubr.msk.bf16.gmra.mrb[4].mxu0 %vm247_vm1, %v240_v13 }
  0xef   : > { %v566_v17 = vpop.f32.mrb[0].mxu0 }
  0xf0   : > { %v307_v18 = vadd.f32 %v566_v17, %v533_v16  ;;  %v298_v19 = vpop.f32.mrb[1].mxu0 }
  0xf1   : > { %v299_v20 = vadd.f32 %v533_v16, %v298_v19  ;;  %v567_v21 = vpop.f32.mrb[2].mxu0 }
  0xf2   : > { %v310_v22 = vadd.f32 %v567_v21, %v533_v16  ;;  %v301_v23 = vpop.f32.mrb[3].mxu0  ;;  %v331_v25 = vmax.f32 %v307_v18, 0.0 }
  0xf3   : > { %v302_v24 = vadd.f32 %v533_v16, %v301_v23  ;;  %v329_v27 = vmax.f32 %v299_v20, 0.0 }
  0xf4   : > { %v332_v26 = vmax.f32 %v310_v22, 0.0 }
  0xf5   : > { %v330_v28 = vmax.f32 %v302_v24, 0.0 }
  0xf6   : > { %v343_v29 = vpack.c.bf16 %v332_v26, %v331_v25 }
  0xf7   : > { %v570_v30 = vpop.f32.mrb[4].mxu0  ;;  %v342_v31 = vpack.c.bf16 %v330_v28, %v329_v27 }
  0xf8   : > { %v323_v32 = vadd.f32 %v570_v30, %v533_v16  ;;  %v314_v33 = vpop.f32.mrb[5].mxu0 }
  0xf9   : > { %v315_v34 = vadd.f32 %v533_v16, %v314_v33  ;;  %v571_v35 = vpop.f32.mrb[6].mxu0  ;;  %576 = vmatprep.mubr.msk.bf16.mxu1 %vm364_vm2, %v342_v31 }
  0xfa   : > { %v326_v36 = vadd.f32 %v571_v35, %v533_v16  ;;  %v317_v37 = vpop.f32.mrb[7].mxu0  ;;  %577 = vmatmul.mubr.msk.bf16.vlgmr.msra.gmra.mrb[0].mxu1 %vm364_vm2, %v343_v29  ;;  %v335_v39 = vmax.f32 %v323_v32, 0.0 }
  0xfb   : > { %v318_v38 = vadd.f32 %v533_v16, %v317_v37  ;;  %v333_v41 = vmax.f32 %v315_v34, 0.0 }
  0xfc   : > { %v336_v40 = vmax.f32 %v326_v36, 0.0 }
  0xfd   : > { %v334_v42 = vmax.f32 %v318_v38, 0.0 }
  0xfe   : > { %v345_v43 = vpack.c.bf16 %v336_v40, %v335_v39 }
  0xff   : > { %v344_v44 = vpack.c.bf16 %v334_v42, %v333_v41 }
 0x101   : > { %580 = vmatprep.mubr.msk.bf16.mxu1 %vm364_vm2, %v344_v44 }
 0x102   : > { %581 = vmatmul.mubr.msk.bf16.gmra.mrb[4].mxu1 %vm364_vm2, %v345_v43 }
 0x1cd   : > { %v578_v46 = vpop.f32.mrb[0].mxu1 }
 0x1ce   : > { %v420_v47 = vadd.f32 %v578_v46, %v538_v45  ;;  %v411_v48 = vpop.f32.mrb[1].mxu1 }
 0x1cf   : > { %v412_v49 = vadd.f32 %v538_v45, %v411_v48  ;;  %v579_v50 = vpop.f32.mrb[2].mxu1 }
 0x1d0   : > { %444 = vst [vmem:[%s218_s6 + $0x10] sm:$0xff] %v420_v47  ;;  %v423_v51 = vadd.f32 %v579_v50, %v538_v45  ;;  %v414_v52 = vpop.f32.mrb[3].mxu1 }
 0x1d1   : > { %442 = vst [vmem:[%s218_s6] sm:$0xff] %v412_v49  ;;  %v415_v53 = vadd.f32 %v538_v45, %v414_v52 }
 0x1d2   : > { %445 = vst [vmem:[%s218_s6 + $0x18] sm:$0xff] %v423_v51 }
 0x1d3   : > { %443 = vst [vmem:[%s218_s6 + $0x8] sm:$0xff] %v415_v53 }
 0x1d5   : > { %v582_v54 = vpop.f32.mrb[4].mxu1 }
 0x1d6   : > { %v436_v55 = vadd.f32 %v582_v54, %v538_v45  ;;  %v427_v56 = vpop.f32.mrb[5].mxu1 }
 0x1d7   : > { %v428_v57 = vadd.f32 %v538_v45, %v427_v56  ;;  %v583_v58 = vpop.f32.mrb[6].mxu1 }
 0x1d8   : > { %448 = vst [vmem:[%s218_s6 + $0x30] sm:$0xff] %v436_v55  ;;  %v439_v59 = vadd.f32 %v583_v58, %v538_v45  ;;  %v430_v60 = vpop.f32.mrb[7].mxu1 }
 0x1d9   : > { %446 = vst [vmem:[%s218_s6 + $0x20] sm:$0xff] %v428_v57  ;;  %v431_v61 = vadd.f32 %v538_v45, %v430_v60 }
 0x1da   : > { %449 = vst [vmem:[%s218_s6 + $0x38] sm:$0xff] %v439_v59 }
 0x1db   : > { %447 = vst [vmem:[%s218_s6 + $0x28] sm:$0xff] %v431_v61 }
 0x1dc   : > { %641 = shalt.err (!%p638_p3)
}
 0x1dd   : > { %s642_s16 = scalar_lea.hbm %s803_s11, 1024  ;;  %s646_s25 = scalar_lea.hbm %s855_s5, 4096 }
 0x1de   : > { %p643_p4 = scmp.ne.s32.totalorder %s803_s11, %s642_s16  ;;  %p647_p9 = scmp.lt.u32.totalorder %s803_s11, %s855_s5 }
 0x1df   : > { %p648_p10 = scmp.lt.u32.totalorder %s646_s25, %s642_s16  ;;  %p650_p12 = scmp.lt.u32.totalorder %s642_s16, %s803_s11 }
 0x1e0   : > { %p644_p7 = pnand %p643_p4, %p763_p5 }
 0x1e1   : > { %p649_p11 = por %p648_p10, %p647_p9 }
 0x1e2   : > { %p645_p8 = pneg %p644_p7 }
 0x1e3   : > { %p651_p13 = por %p650_p12, %p649_p11 }
 0x1e5   : > { %p652_p0 = pnand %p651_p13, %p645_p8 }
 0x1e7   : > { %655 = shalt.err (!%p652_p0)
}
 0x1e8   : > { %s693_s6 = smov 128   ;;  %s694_s7 = smov 8  }
 0x1e9   : > { %585 = dma.vmem_to_hbm [thread:$0]  (%p763_p5), %s805_s8, 1024, %s803_s11, %s809_s22, %s693_s6, %s693_s6, %s694_s7  }
 0x1ea PF: > { %p591_p1 = scmp.ge.s32.totalorder %s690_s21, 2  ;;  %s479_s9 = sand.u32 1, %s678_s18  }
 0x1eb   : > { %s480_s10 = scalar_lea.sflag [#allocation3], %s479_s9 }
 0x1ec   : > { %p588_p2 = pnand %p591_p1, %p767_p6 }
 0x1ee   : > { %673 = dma.done.wait (!%p588_p2), %s480_s10, 1024  }
 0x1ef   : > { %675 = vsyncadd (!%p588_p2), %s480_s10, 4294966272  ;;  %p15_p3 = scmp.ge.s32.totalorder %s750_s24, 6   ;;  %s858_s18 = smov %s682_s19 }
 0x1f0   : > { %s859_s19 = smov %s686_s20  ;;  %s860_s20 = smov %s761_s27 }
 0x1f1   : > { %s861_s21 = smov %s750_s24  ;;  %17 = sbr.rel (!%p15_p3) target bundleno = 3 (0x3), region = 75 }
 0x1f8   :  { %485 = vsyncpa [#allocation3], 1 }
 0x1f9   :  { %487 = vsyncpa [#allocation3 + $0x1], 1 }

</bundles_post_ra>
